<compile_context>
chip_gen: v5e
topology: v5e:2x2
jax: 0.10.0
libtpu: 0.0.40
codegen_flags: <defaults>
</compile_context>

<pallas_src>
import math

import jax
import jax.numpy as jnp
from jax.experimental import pallas as pl
from jax.experimental.pallas import tpu as pltpu

# ----------------------------- hparams (small) ------------------------------
N_MEL = 8                        # hparams.n_mel_channels
EMB_DIMS = (32, 32, 32, 32)      # hparams.postnet_embedding_dims
KSIZE = 5                        # hparams.postnet_kernel_sizes[i] (all 5)
PAD = KSIZE // 2
P_DROP = 0.5                     # hparams.p_postnet_dropout
BN_EPS = 1e-5

B = 2
T = 16

C_PAD = 32                       # uniform padded channel width inside the kernel
N_LAYERS = len(EMB_DIMS) + 1     # 5 convolutions total


# --------------------------------- kernels -----------------------------------
def _postnet_body(x_ref, w_ref, s_ref, m_ref, o_ref, halo_ref):
    """Fused 5-layer postnet on one batch tile.

    x_ref   : (bt, T, C_PAD)                   channel-padded, channels-last input
    w_ref   : (N_LAYERS, KSIZE*C_PAD, C_PAD)   BN-folded im2col weights (bf16/f32)
    s_ref   : (N_LAYERS, 1, C_PAD)             per-output-channel shifts (f32)
    m_ref   : (N_LAYERS, bt, T, C_PAD) int8    dropout keep bits, or None in eval
    o_ref   : (bt, T, C_PAD)
    halo_ref: (bt, T_HALO, C_PAD) f32          persistent time-halo scratch
    """
    bt, t, c = x_ref.shape
    inv_keep = 1.0 / (1.0 - P_DROP)

    # Zero the whole scratch once per invocation; the PAD-wide halo regions are
    # never written afterwards, so they stay zero (exact 'same' conv padding,
    # each grid tile is a full sequence).
    halo_ref[...] = jnp.zeros_like(halo_ref)

    h = x_ref[...]                                       # (bt, T, C) f32

    # Static 5-iteration unroll: all weights stay VMEM-resident across layers.
    for layer in range(N_LAYERS):
        halo_ref[:, PAD:PAD + t, :] = h                  # write interior only
        # im2col: K time-shifted views read from the halo scratch, concatenated
        # along the lane dim -> one fat MXU matmul per layer (K dim = 160).
        cols = jnp.concatenate(
            [halo_ref[:, k:k + t, :] for k in range(KSIZE)], axis=-1)
        acts = jnp.dot(
            cols.reshape(bt * t, KSIZE * c).astype(w_ref.dtype),
            w_ref[layer],
            preferred_element_type=jnp.float32)          # (bt*T, C) f32 acc
        acts = acts + s_ref[layer]                       # folded bias + BN
        if layer < N_LAYERS - 1:
            acts = jnp.tanh(acts)
        if m_ref is not None:                            # training only
            keep = m_ref[layer].astype(jnp.float32).reshape(bt * t, c)
            acts = acts * (keep * inv_keep)
        h = acts.reshape(bt, t, c)

    o_ref[...] = h


def _eval_kernel(x_ref, w_ref, s_ref, o_ref, halo_ref):
    _postnet_body(x_ref, w_ref, s_ref, None, o_ref, halo_ref)


def _train_kernel(x_ref, w_ref, s_ref, m_ref, o_ref, halo_ref):
    _postnet_body(x_ref, w_ref, s_ref, m_ref, o_ref, halo_ref)


# ---------------------------- folding / wrapper ------------------------------
def _fold_layer(w, bias, gamma, beta, mean, var):
    """Fold conv bias + eval-mode BatchNorm into im2col weight + shift.

    w: (C_out, C_in, K) torch Conv1d layout.
    Returns w_col: (K*C_PAD, C_PAD), shift: (C_PAD,)
    """
    c_out, c_in, k = w.shape
    scale = gamma / jnp.sqrt(var + BN_EPS)                           # (C_out,)
    w_f = w * scale[:, None, None]                                   # scale into W
    shift = scale * (bias - mean) + beta                             # (C_out,)
    # zero-pad channels to the uniform C_PAD width (padded channels stay 0)
    w_f = jnp.pad(w_f, ((0, C_PAD - c_out), (0, C_PAD - c_in), (0, 0)))
    shift = jnp.pad(shift, (0, C_PAD - c_out))
    # column ordering must match the kernel's im2col concat: (k-major, c-minor)
    w_col = jnp.transpose(w_f, (2, 1, 0)).reshape(k * C_PAD, C_PAD)
    return w_col, shift


def fold_params(params, matmul_dtype=jnp.bfloat16):
    """Stack the 5 layers' folded weights/shifts; weights cast to matmul dtype."""
    w_cols, shifts = [], []
    for (w, bias, gamma, beta, mean, var) in params:
        wc, sh = _fold_layer(w, bias, gamma, beta, mean, var)
        w_cols.append(wc)
        shifts.append(sh)
    w_stack = jnp.stack(w_cols).astype(matmul_dtype)      # (L, K*C_PAD, C_PAD)
    s_stack = jnp.stack(shifts)[:, None, :].astype(jnp.float32)  # (L, 1, C_PAD)
    return w_stack, s_stack


def _to_channels_last(x):
    """(B, n_mel, T) -> (B, T, C_PAD) f32, zero-padded channels."""
    b, n_mel, t = x.shape
    x_btc = jnp.transpose(x, (0, 2, 1))
    return jnp.pad(x_btc, ((0, 0), (0, 0), (0, C_PAD - n_mel))).astype(jnp.float32)


def _from_channels_last(y, n_mel=N_MEL):
    """(B, T, C_PAD) -> (B, n_mel, T)."""
    return jnp.transpose(y[:, :, :n_mel], (0, 2, 1))


def conv_postnet_forward(x, folded, *, keep_masks=None, batch_tile=1):
    """x: (B, n_mel, T) as in the torch module. Returns (B, n_mel, T).

    keep_masks: None (eval) or int8 keep-bits of shape (N_LAYERS, B, T, C_PAD)
    (training; scaling by 1/(1-p) is done in-kernel).
    """
    w_stack, s_stack = folded
    b, n_mel, t = x.shape

    x_btc = _to_channels_last(x)

    bt = batch_tile if (batch_tile > 0 and b % batch_tile == 0) else 1
    grid = (b // bt,)
    t_halo = -(-(t + 2 * PAD) // 8) * 8                   # round up to sublane

    act_spec = pl.BlockSpec((bt, t, C_PAD), lambda i: (i, 0, 0))
    const3 = lambda i: (0, 0, 0)                          # weights stay resident

    in_specs = [act_spec,
                pl.BlockSpec(w_stack.shape, const3),
                pl.BlockSpec(s_stack.shape, const3)]
    args = [x_btc, w_stack, s_stack]
    kernel = _eval_kernel
    if keep_masks is not None:
        in_specs.append(
            pl.BlockSpec((N_LAYERS, bt, t, C_PAD), lambda i: (0, i, 0, 0)))
        args.append(keep_masks.astype(jnp.int8))
        kernel = _train_kernel

    out = pl.pallas_call(
        kernel,
        out_shape=jax.ShapeDtypeStruct((b, t, C_PAD), jnp.float32),
        grid=grid,
        in_specs=in_specs,
        out_specs=act_spec,
        scratch_shapes=[pltpu.VMEM((bt, t_halo, C_PAD), jnp.float32)],
        compiler_params=pltpu.CompilerParams(
            dimension_semantics=("parallel",),
            vmem_limit_bytes=32 * 1024 * 1024),
    )(*args)

    # drop padded channels, back to PyTorch (B, n_mel, T) layout
    return _from_channels_last(out, n_mel)


# ---------------- pure-JAX emulation of the folded/fused math ----------------
def folded_postnet_jax(x_btc, w_stack, s_stack, keep_masks=None):
    """Mirrors the kernel math exactly (same folded arrays, same im2col order)."""
    b, t, c = x_btc.shape
    h = x_btc
    for layer in range(N_LAYERS):
        hp = jnp.pad(h, ((0, 0), (PAD, PAD), (0, 0)))
        cols = jnp.concatenate([hp[:, k:k + t, :] for k in range(KSIZE)], axis=-1)
        acts = jnp.dot(cols.reshape(b * t, KSIZE * c).astype(w_stack.dtype),
                       w_stack[layer], preferred_element_type=jnp.float32)
        acts = acts + s_stack[layer]
        if layer < N_LAYERS - 1:
            acts = jnp.tanh(acts)
        if keep_masks is not None:
            keep = keep_masks[layer].reshape(b * t, c).astype(jnp.float32)
            acts = acts * (keep / (1.0 - P_DROP))
        h = acts.reshape(b, t, c)
    return h


# -------------------- independent lax-conv reference -------------------------
def conv_postnet_reference(x, params, masks=None):
    """Reference forward (eval-mode BN); masks (if given) already 1/(1-p)-scaled,
    shape (L, B, T, C_PAD)."""
    h = x
    for i, (w, bias, gamma, beta, mean, var) in enumerate(params):
        y = jax.lax.conv_general_dilated(
            h, w, window_strides=(1,), padding=((PAD, PAD),),
            dimension_numbers=('NCH', 'OIH', 'NCH'),
            precision=jax.lax.Precision.HIGHEST)
        y = y + bias[None, :, None]
        y = (y - mean[None, :, None]) / jnp.sqrt(var[None, :, None] + BN_EPS)
        y = gamma[None, :, None] * y + beta[None, :, None]
        if i < N_LAYERS - 1:
            y = jnp.tanh(y)
        if masks is not None:
            c_out = w.shape[0]
            m = jnp.transpose(masks[i][:, :, :c_out], (0, 2, 1))   # (B, c_out, T)
            y = y * m
        h = y
    return h


# ------------------------------ parameter init --------------------------------
def init_params(key):
    in_ch = (N_MEL,) + EMB_DIMS
    out_ch = EMB_DIMS + (N_MEL,)
    gains = (5.0 / 3.0,) * len(EMB_DIMS) + (1.0,)   # tanh gain, linear on last
    params = []
    for i in range(N_LAYERS):
        key, kw, kb, kg, kbt, km, kv = jax.random.split(key, 7)
        c_in, c_out = in_ch[i], out_ch[i]
        fan_in = c_in * KSIZE
        fan_out = c_out * KSIZE
        a = gains[i] * math.sqrt(6.0 / (fan_in + fan_out))
        w = jax.random.uniform(kw, (c_out, c_in, KSIZE), jnp.float32, -a, a)
        bound = 1.0 / math.sqrt(fan_in)
        bias = jax.random.uniform(kb, (c_out,), jnp.float32, -bound, bound)
        gamma = jax.random.uniform(kg, (c_out,), jnp.float32, 0.5, 1.5)
        beta = 0.1 * jax.random.normal(kbt, (c_out,), jnp.float32)
        mean = 0.1 * jax.random.normal(km, (c_out,), jnp.float32)
        var = jax.random.uniform(kv, (c_out,), jnp.float32, 0.5, 1.5)
        params.append((w, bias, gamma, beta, mean, var))
    return params


# ----------------------------------- main -------------------------------------
if __name__ == "__main__":
    key = jax.random.PRNGKey(0)
    k_x, k_p = jax.random.split(key)
    k_m = jax.random.fold_in(key, 7)

    x = jax.random.normal(k_x, (B, N_MEL, T), jnp.float32)
    params = init_params(k_p)

    folded_bf16 = fold_params(params, jnp.bfloat16)   # perf config (v6e/v7x MXU)
    folded_f32 = fold_params(params, jnp.float32)     # exactness config

    # 1) Default perf config: bf16 matmul operands, eval mode (no mask input).
    out = jax.block_until_ready(conv_postnet_forward(x, folded_bf16))
    assert out.shape == (B, N_MEL, T), out.shape
    assert bool(jnp.all(jnp.isfinite(out)))

    # Tight check of the Pallas bf16 path against a pure-JAX emulation of the
    # identical folded math (same bf16-rounded weights, f32 accumulation).
    x_btc = _to_channels_last(x)
    emu = _from_channels_last(folded_postnet_jax(x_btc, *folded_bf16))
    err_bf16 = float(jnp.max(jnp.abs(out - emu)))
    assert err_bf16 < 5e-3, f"bf16 path vs folded-JAX emulation: {err_bf16}"

    # 2) f32 kernel vs independent HIGHEST-precision lax-conv reference:
    #    validates BN folding + im2col fusion end to end.
    out_f32 = jax.block_until_ready(conv_postnet_forward(x, folded_f32))
    ref = conv_postnet_reference(x, params)
    err_f32 = float(jnp.max(jnp.abs(out_f32 - ref)))
    assert err_f32 < 5e-2, f"f32 fusion vs lax reference: {err_f32}"

    # 3) Training mode: int8 keep-bit masks (dropout after every layer,
    #    including the last, matching F.dropout in the torch forward).
    keep = jax.random.bernoulli(
        k_m, 1.0 - P_DROP, (N_LAYERS, B, T, C_PAD)).astype(jnp.int8)
    out_tr = jax.block_until_ready(
        conv_postnet_forward(x, folded_bf16, keep_masks=keep))
    emu_tr = _from_channels_last(
        folded_postnet_jax(x_btc, *folded_bf16, keep_masks=keep))
    err_tr = float(jnp.max(jnp.abs(out_tr - emu_tr)))
    assert err_tr < 5e-3, f"training path vs folded-JAX emulation: {err_tr}"

    print("KERNEL_OK")
</pallas_src>

<mosaic_0001>
module attributes {stable_mosaic.version = 11 : i64} {
  func.func @_eval_kernel(%arg0: i32, %arg1: memref<1x16x32xf32, #tpu.memory_space<vmem>>, %arg2: memref<5x160x32xbf16, #tpu.memory_space<vmem>>, %arg3: memref<5x1x32xf32, #tpu.memory_space<vmem>>, %arg4: memref<1x16x32xf32, #tpu.memory_space<vmem>>, %arg5: memref<1x24x32xf32, #tpu.memory_space<vmem>>) attributes {dimension_semantics = [#tpu.dimension_semantics<parallel>], iteration_bounds = array<i64: 2>, scalar_prefetch = 0 : i64, scratch_operands = 1 : i64, tpu.core_type = #tpu.core_type<tc>, window_params = [{transform_indices = @transform_0, window_bounds = array<i64: 1, 16, 32>}, {pipeline_mode = #tpu.pipeline_mode<synchronous>, transform_indices = @transform_1, window_bounds = array<i64: 5, 160, 32>}, {pipeline_mode = #tpu.pipeline_mode<synchronous>, transform_indices = @transform_2, window_bounds = array<i64: 5, 1, 32>}, {transform_indices = @transform_3, window_bounds = array<i64: 1, 16, 32>}]} {
    %cst = arith.constant 0.000000e+00 : f32
    %0 = vector.broadcast %cst : f32 to vector<1x24x32xf32>
    %c0 = arith.constant 0 : index
    %c0_0 = arith.constant 0 : index
    %c0_1 = arith.constant 0 : index
    %1 = vector.load %arg5[%c0, %c0_0, %c0_1] : memref<1x24x32xf32, #tpu.memory_space<vmem>>, vector<1x24x32xf32>
    tpu.vector_store %arg5[%c0, %c0_0, %c0_1], %0 {strides = array<i32>} : memref<1x24x32xf32, #tpu.memory_space<vmem>>, vector<1x24x32xf32>,
    %c0_2 = arith.constant 0 : index
    %c0_3 = arith.constant 0 : index
    %c0_4 = arith.constant 0 : index
    %2 = vector.load %arg1[%c0_2, %c0_3, %c0_4] : memref<1x16x32xf32, #tpu.memory_space<vmem>>, vector<1x16x32xf32>
    %c0_5 = arith.constant 0 : index
    %c2 = arith.constant 2 : index
    %c0_6 = arith.constant 0 : index
    %3 = vector.load %arg5[%c0_5, %c2, %c0_6] : memref<1x24x32xf32, #tpu.memory_space<vmem>>, vector<1x16x32xf32>
    tpu.vector_store %arg5[%c0_5, %c2, %c0_6], %2 {strides = array<i32>} : memref<1x24x32xf32, #tpu.memory_space<vmem>>, vector<1x16x32xf32>,
    %c0_7 = arith.constant 0 : index
    %c0_8 = arith.constant 0 : index
    %c0_9 = arith.constant 0 : index
    %4 = vector.load %arg5[%c0_7, %c0_8, %c0_9] : memref<1x24x32xf32, #tpu.memory_space<vmem>>, vector<1x16x32xf32>
    %c0_10 = arith.constant 0 : index
    %c1 = arith.constant 1 : index
    %c0_11 = arith.constant 0 : index
    %5 = vector.load %arg5[%c0_10, %c1, %c0_11] : memref<1x24x32xf32, #tpu.memory_space<vmem>>, vector<1x16x32xf32>
    %c0_12 = arith.constant 0 : index
    %c2_13 = arith.constant 2 : index
    %c0_14 = arith.constant 0 : index
    %6 = vector.load %arg5[%c0_12, %c2_13, %c0_14] : memref<1x24x32xf32, #tpu.memory_space<vmem>>, vector<1x16x32xf32>
    %c0_15 = arith.constant 0 : index
    %c3 = arith.constant 3 : index
    %c0_16 = arith.constant 0 : index
    %7 = vector.load %arg5[%c0_15, %c3, %c0_16] : memref<1x24x32xf32, #tpu.memory_space<vmem>>, vector<1x16x32xf32>
    %c0_17 = arith.constant 0 : index
    %c4 = arith.constant 4 : index
    %c0_18 = arith.constant 0 : index
    %8 = vector.load %arg5[%c0_17, %c4, %c0_18] : memref<1x24x32xf32, #tpu.memory_space<vmem>>, vector<1x16x32xf32>
    %9 = tpu.concatenate %4, %5, %6, %7, %8 in 2 : vector<1x16x32xf32>, vector<1x16x32xf32>, vector<1x16x32xf32>, vector<1x16x32xf32>, vector<1x16x32xf32> -> vector<1x16x160xf32>
    %10 = vector.shape_cast %9 : vector<1x16x160xf32> to vector<16x160xf32>
    %11 = arith.truncf %10 : vector<16x160xf32> to vector<16x160xbf16>
    %c0_19 = arith.constant 0 : index
    %c0_20 = arith.constant 0 : index
    %c0_21 = arith.constant 0 : index
    %12 = vector.load %arg2[%c0_19, %c0_20, %c0_21] : memref<5x160x32xbf16, #tpu.memory_space<vmem>>, vector<1x160x32xbf16>
    %13 = vector.shape_cast %12 : vector<1x160x32xbf16> to vector<160x32xbf16>
    %cst_22 = arith.constant dense<0.000000e+00> : vector<16x32xf32>
    %14 = tpu.matmul %11, %13, %cst_22 {dimension_numbers = #tpu.dot_dimension_numbers<[1], [0], [0], [1], [0, 0, 1, 1], [], []>} : vector<16x160xbf16>, vector<160x32xbf16>, vector<16x32xf32> -> vector<16x32xf32>
    %c0_23 = arith.constant 0 : index
    %c0_24 = arith.constant 0 : index
    %c0_25 = arith.constant 0 : index
    %15 = vector.load %arg3[%c0_23, %c0_24, %c0_25] : memref<5x1x32xf32, #tpu.memory_space<vmem>>, vector<1x1x32xf32>
    %16 = vector.shape_cast %15 : vector<1x1x32xf32> to vector<1x32xf32>
    %17 = vector.broadcast %16 : vector<1x32xf32> to vector<16x32xf32>
    %18 = arith.addf %14, %17 : vector<16x32xf32>
    %19 = math.tanh %18 : vector<16x32xf32>
    %20 = vector.shape_cast %19 : vector<16x32xf32> to vector<1x16x32xf32>
    %c0_26 = arith.constant 0 : index
    %c2_27 = arith.constant 2 : index
    %c0_28 = arith.constant 0 : index
    %21 = vector.load %arg5[%c0_26, %c2_27, %c0_28] : memref<1x24x32xf32, #tpu.memory_space<vmem>>, vector<1x16x32xf32>
    tpu.vector_store %arg5[%c0_26, %c2_27, %c0_28], %20 {strides = array<i32>} : memref<1x24x32xf32, #tpu.memory_space<vmem>>, vector<1x16x32xf32>,
    %c0_29 = arith.constant 0 : index
    %c0_30 = arith.constant 0 : index
    %c0_31 = arith.constant 0 : index
    %22 = vector.load %arg5[%c0_29, %c0_30, %c0_31] : memref<1x24x32xf32, #tpu.memory_space<vmem>>, vector<1x16x32xf32>
    %c0_32 = arith.constant 0 : index
    %c1_33 = arith.constant 1 : index
    %c0_34 = arith.constant 0 : index
    %23 = vector.load %arg5[%c0_32, %c1_33, %c0_34] : memref<1x24x32xf32, #tpu.memory_space<vmem>>, vector<1x16x32xf32>
    %c0_35 = arith.constant 0 : index
    %c2_36 = arith.constant 2 : index
    %c0_37 = arith.constant 0 : index
    %24 = vector.load %arg5[%c0_35, %c2_36, %c0_37] : memref<1x24x32xf32, #tpu.memory_space<vmem>>, vector<1x16x32xf32>
    %c0_38 = arith.constant 0 : index
    %c3_39 = arith.constant 3 : index
    %c0_40 = arith.constant 0 : index
    %25 = vector.load %arg5[%c0_38, %c3_39, %c0_40] : memref<1x24x32xf32, #tpu.memory_space<vmem>>, vector<1x16x32xf32>
    %c0_41 = arith.constant 0 : index
    %c4_42 = arith.constant 4 : index
    %c0_43 = arith.constant 0 : index
    %26 = vector.load %arg5[%c0_41, %c4_42, %c0_43] : memref<1x24x32xf32, #tpu.memory_space<vmem>>, vector<1x16x32xf32>
    %27 = tpu.concatenate %22, %23, %24, %25, %26 in 2 : vector<1x16x32xf32>, vector<1x16x32xf32>, vector<1x16x32xf32>, vector<1x16x32xf32>, vector<1x16x32xf32> -> vector<1x16x160xf32>
    %28 = vector.shape_cast %27 : vector<1x16x160xf32> to vector<16x160xf32>
    %29 = arith.truncf %28 : vector<16x160xf32> to vector<16x160xbf16>
    %c1_44 = arith.constant 1 : index
    %c0_45 = arith.constant 0 : index
    %c0_46 = arith.constant 0 : index
    %30 = vector.load %arg2[%c1_44, %c0_45, %c0_46] : memref<5x160x32xbf16, #tpu.memory_space<vmem>>, vector<1x160x32xbf16>
    %31 = vector.shape_cast %30 : vector<1x160x32xbf16> to vector<160x32xbf16>
    %cst_47 = arith.constant dense<0.000000e+00> : vector<16x32xf32>
    %32 = tpu.matmul %29, %31, %cst_47 {dimension_numbers = #tpu.dot_dimension_numbers<[1], [0], [0], [1], [0, 0, 1, 1], [], []>} : vector<16x160xbf16>, vector<160x32xbf16>, vector<16x32xf32> -> vector<16x32xf32>
    %c1_48 = arith.constant 1 : index
    %c0_49 = arith.constant 0 : index
    %c0_50 = arith.constant 0 : index
    %33 = vector.load %arg3[%c1_48, %c0_49, %c0_50] : memref<5x1x32xf32, #tpu.memory_space<vmem>>, vector<1x1x32xf32>
    %34 = vector.shape_cast %33 : vector<1x1x32xf32> to vector<1x32xf32>
    %35 = vector.broadcast %34 : vector<1x32xf32> to vector<16x32xf32>
    %36 = arith.addf %32, %35 : vector<16x32xf32>
    %37 = math.tanh %36 : vector<16x32xf32>
    %38 = vector.shape_cast %37 : vector<16x32xf32> to vector<1x16x32xf32>
    %c0_51 = arith.constant 0 : index
    %c2_52 = arith.constant 2 : index
    %c0_53 = arith.constant 0 : index
    %39 = vector.load %arg5[%c0_51, %c2_52, %c0_53] : memref<1x24x32xf32, #tpu.memory_space<vmem>>, vector<1x16x32xf32>
    tpu.vector_store %arg5[%c0_51, %c2_52, %c0_53], %38 {strides = array<i32>} : memref<1x24x32xf32, #tpu.memory_space<vmem>>, vector<1x16x32xf32>,
    %c0_54 = arith.constant 0 : index
    %c0_55 = arith.constant 0 : index
    %c0_56 = arith.constant 0 : index
    %40 = vector.load %arg5[%c0_54, %c0_55, %c0_56] : memref<1x24x32xf32, #tpu.memory_space<vmem>>, vector<1x16x32xf32>
    %c0_57 = arith.constant 0 : index
    %c1_58 = arith.constant 1 : index
    %c0_59 = arith.constant 0 : index
    %41 = vector.load %arg5[%c0_57, %c1_58, %c0_59] : memref<1x24x32xf32, #tpu.memory_space<vmem>>, vector<1x16x32xf32>
    %c0_60 = arith.constant 0 : index
    %c2_61 = arith.constant 2 : index
    %c0_62 = arith.constant 0 : index
    %42 = vector.load %arg5[%c0_60, %c2_61, %c0_62] : memref<1x24x32xf32, #tpu.memory_space<vmem>>, vector<1x16x32xf32>
    %c0_63 = arith.constant 0 : index
    %c3_64 = arith.constant 3 : index
    %c0_65 = arith.constant 0 : index
    %43 = vector.load %arg5[%c0_63, %c3_64, %c0_65] : memref<1x24x32xf32, #tpu.memory_space<vmem>>, vector<1x16x32xf32>
    %c0_66 = arith.constant 0 : index
    %c4_67 = arith.constant 4 : index
    %c0_68 = arith.constant 0 : index
    %44 = vector.load %arg5[%c0_66, %c4_67, %c0_68] : memref<1x24x32xf32, #tpu.memory_space<vmem>>, vector<1x16x32xf32>
    %45 = tpu.concatenate %40, %41, %42, %43, %44 in 2 : vector<1x16x32xf32>, vector<1x16x32xf32>, vector<1x16x32xf32>, vector<1x16x32xf32>, vector<1x16x32xf32> -> vector<1x16x160xf32>
    %46 = vector.shape_cast %45 : vector<1x16x160xf32> to vector<16x160xf32>
    %47 = arith.truncf %46 : vector<16x160xf32> to vector<16x160xbf16>
    %c2_69 = arith.constant 2 : index
    %c0_70 = arith.constant 0 : index
    %c0_71 = arith.constant 0 : index
    %48 = vector.load %arg2[%c2_69, %c0_70, %c0_71] : memref<5x160x32xbf16, #tpu.memory_space<vmem>>, vector<1x160x32xbf16>
    %49 = vector.shape_cast %48 : vector<1x160x32xbf16> to vector<160x32xbf16>
    %cst_72 = arith.constant dense<0.000000e+00> : vector<16x32xf32>
    %50 = tpu.matmul %47, %49, %cst_72 {dimension_numbers = #tpu.dot_dimension_numbers<[1], [0], [0], [1], [0, 0, 1, 1], [], []>} : vector<16x160xbf16>, vector<160x32xbf16>, vector<16x32xf32> -> vector<16x32xf32>
    %c2_73 = arith.constant 2 : index
    %c0_74 = arith.constant 0 : index
    %c0_75 = arith.constant 0 : index
    %51 = vector.load %arg3[%c2_73, %c0_74, %c0_75] : memref<5x1x32xf32, #tpu.memory_space<vmem>>, vector<1x1x32xf32>
    %52 = vector.shape_cast %51 : vector<1x1x32xf32> to vector<1x32xf32>
    %53 = vector.broadcast %52 : vector<1x32xf32> to vector<16x32xf32>
    %54 = arith.addf %50, %53 : vector<16x32xf32>
    %55 = math.tanh %54 : vector<16x32xf32>
    %56 = vector.shape_cast %55 : vector<16x32xf32> to vector<1x16x32xf32>
    %c0_76 = arith.constant 0 : index
    %c2_77 = arith.constant 2 : index
    %c0_78 = arith.constant 0 : index
    %57 = vector.load %arg5[%c0_76, %c2_77, %c0_78] : memref<1x24x32xf32, #tpu.memory_space<vmem>>, vector<1x16x32xf32>
    tpu.vector_store %arg5[%c0_76, %c2_77, %c0_78], %56 {strides = array<i32>} : memref<1x24x32xf32, #tpu.memory_space<vmem>>, vector<1x16x32xf32>,
    %c0_79 = arith.constant 0 : index
    %c0_80 = arith.constant 0 : index
    %c0_81 = arith.constant 0 : index
    %58 = vector.load %arg5[%c0_79, %c0_80, %c0_81] : memref<1x24x32xf32, #tpu.memory_space<vmem>>, vector<1x16x32xf32>
    %c0_82 = arith.constant 0 : index
    %c1_83 = arith.constant 1 : index
    %c0_84 = arith.constant 0 : index
    %59 = vector.load %arg5[%c0_82, %c1_83, %c0_84] : memref<1x24x32xf32, #tpu.memory_space<vmem>>, vector<1x16x32xf32>
    %c0_85 = arith.constant 0 : index
    %c2_86 = arith.constant 2 : index
    %c0_87 = arith.constant 0 : index
    %60 = vector.load %arg5[%c0_85, %c2_86, %c0_87] : memref<1x24x32xf32, #tpu.memory_space<vmem>>, vector<1x16x32xf32>
    %c0_88 = arith.constant 0 : index
    %c3_89 = arith.constant 3 : index
    %c0_90 = arith.constant 0 : index
    %61 = vector.load %arg5[%c0_88, %c3_89, %c0_90] : memref<1x24x32xf32, #tpu.memory_space<vmem>>, vector<1x16x32xf32>
    %c0_91 = arith.constant 0 : index
    %c4_92 = arith.constant 4 : index
    %c0_93 = arith.constant 0 : index
    %62 = vector.load %arg5[%c0_91, %c4_92, %c0_93] : memref<1x24x32xf32, #tpu.memory_space<vmem>>, vector<1x16x32xf32>
    %63 = tpu.concatenate %58, %59, %60, %61, %62 in 2 : vector<1x16x32xf32>, vector<1x16x32xf32>, vector<1x16x32xf32>, vector<1x16x32xf32>, vector<1x16x32xf32> -> vector<1x16x160xf32>
    %64 = vector.shape_cast %63 : vector<1x16x160xf32> to vector<16x160xf32>
    %65 = arith.truncf %64 : vector<16x160xf32> to vector<16x160xbf16>
    %c3_94 = arith.constant 3 : index
    %c0_95 = arith.constant 0 : index
    %c0_96 = arith.constant 0 : index
    %66 = vector.load %arg2[%c3_94, %c0_95, %c0_96] : memref<5x160x32xbf16, #tpu.memory_space<vmem>>, vector<1x160x32xbf16>
    %67 = vector.shape_cast %66 : vector<1x160x32xbf16> to vector<160x32xbf16>
    %cst_97 = arith.constant dense<0.000000e+00> : vector<16x32xf32>
    %68 = tpu.matmul %65, %67, %cst_97 {dimension_numbers = #tpu.dot_dimension_numbers<[1], [0], [0], [1], [0, 0, 1, 1], [], []>} : vector<16x160xbf16>, vector<160x32xbf16>, vector<16x32xf32> -> vector<16x32xf32>
    %c3_98 = arith.constant 3 : index
    %c0_99 = arith.constant 0 : index
    %c0_100 = arith.constant 0 : index
    %69 = vector.load %arg3[%c3_98, %c0_99, %c0_100] : memref<5x1x32xf32, #tpu.memory_space<vmem>>, vector<1x1x32xf32>
    %70 = vector.shape_cast %69 : vector<1x1x32xf32> to vector<1x32xf32>
    %71 = vector.broadcast %70 : vector<1x32xf32> to vector<16x32xf32>
    %72 = arith.addf %68, %71 : vector<16x32xf32>
    %73 = math.tanh %72 : vector<16x32xf32>
    %74 = vector.shape_cast %73 : vector<16x32xf32> to vector<1x16x32xf32>
    %c0_101 = arith.constant 0 : index
    %c2_102 = arith.constant 2 : index
    %c0_103 = arith.constant 0 : index
    %75 = vector.load %arg5[%c0_101, %c2_102, %c0_103] : memref<1x24x32xf32, #tpu.memory_space<vmem>>, vector<1x16x32xf32>
    tpu.vector_store %arg5[%c0_101, %c2_102, %c0_103], %74 {strides = array<i32>} : memref<1x24x32xf32, #tpu.memory_space<vmem>>, vector<1x16x32xf32>,
    %c0_104 = arith.constant 0 : index
    %c0_105 = arith.constant 0 : index
    %c0_106 = arith.constant 0 : index
    %76 = vector.load %arg5[%c0_104, %c0_105, %c0_106] : memref<1x24x32xf32, #tpu.memory_space<vmem>>, vector<1x16x32xf32>
    %c0_107 = arith.constant 0 : index
    %c1_108 = arith.constant 1 : index
    %c0_109 = arith.constant 0 : index
    %77 = vector.load %arg5[%c0_107, %c1_108, %c0_109] : memref<1x24x32xf32, #tpu.memory_space<vmem>>, vector<1x16x32xf32>
    %c0_110 = arith.constant 0 : index
    %c2_111 = arith.constant 2 : index
    %c0_112 = arith.constant 0 : index
    %78 = vector.load %arg5[%c0_110, %c2_111, %c0_112] : memref<1x24x32xf32, #tpu.memory_space<vmem>>, vector<1x16x32xf32>
    %c0_113 = arith.constant 0 : index
    %c3_114 = arith.constant 3 : index
    %c0_115 = arith.constant 0 : index
    %79 = vector.load %arg5[%c0_113, %c3_114, %c0_115] : memref<1x24x32xf32, #tpu.memory_space<vmem>>, vector<1x16x32xf32>
    %c0_116 = arith.constant 0 : index
    %c4_117 = arith.constant 4 : index
    %c0_118 = arith.constant 0 : index
    %80 = vector.load %arg5[%c0_116, %c4_117, %c0_118] : memref<1x24x32xf32, #tpu.memory_space<vmem>>, vector<1x16x32xf32>
    %81 = tpu.concatenate %76, %77, %78, %79, %80 in 2 : vector<1x16x32xf32>, vector<1x16x32xf32>, vector<1x16x32xf32>, vector<1x16x32xf32>, vector<1x16x32xf32> -> vector<1x16x160xf32>
    %82 = vector.shape_cast %81 : vector<1x16x160xf32> to vector<16x160xf32>
    %83 = arith.truncf %82 : vector<16x160xf32> to vector<16x160xbf16>
    %c4_119 = arith.constant 4 : index
    %c0_120 = arith.constant 0 : index
    %c0_121 = arith.constant 0 : index
    %84 = vector.load %arg2[%c4_119, %c0_120, %c0_121] : memref<5x160x32xbf16, #tpu.memory_space<vmem>>, vector<1x160x32xbf16>
    %85 = vector.shape_cast %84 : vector<1x160x32xbf16> to vector<160x32xbf16>
    %cst_122 = arith.constant dense<0.000000e+00> : vector<16x32xf32>
    %86 = tpu.matmul %83, %85, %cst_122 {dimension_numbers = #tpu.dot_dimension_numbers<[1], [0], [0], [1], [0, 0, 1, 1], [], []>} : vector<16x160xbf16>, vector<160x32xbf16>, vector<16x32xf32> -> vector<16x32xf32>
    %c4_123 = arith.constant 4 : index
    %c0_124 = arith.constant 0 : index
    %c0_125 = arith.constant 0 : index
    %87 = vector.load %arg3[%c4_123, %c0_124, %c0_125] : memref<5x1x32xf32, #tpu.memory_space<vmem>>, vector<1x1x32xf32>
    %88 = vector.shape_cast %87 : vector<1x1x32xf32> to vector<1x32xf32>
    %89 = vector.broadcast %88 : vector<1x32xf32> to vector<16x32xf32>
    %90 = arith.addf %86, %89 : vector<16x32xf32>
    %91 = vector.shape_cast %90 : vector<16x32xf32> to vector<1x16x32xf32>
    %c0_126 = arith.constant 0 : index
    %c0_127 = arith.constant 0 : index
    %c0_128 = arith.constant 0 : index
    %92 = vector.load %arg4[%c0_126, %c0_127, %c0_128] : memref<1x16x32xf32, #tpu.memory_space<vmem>>, vector<1x16x32xf32>
    tpu.vector_store %arg4[%c0_126, %c0_127, %c0_128], %91 {strides = array<i32>} : memref<1x16x32xf32, #tpu.memory_space<vmem>>, vector<1x16x32xf32>,
    return
  }
  func.func @transform_0(%arg0: i32) -> (i32, i32, i32) {
    %c0_i32 = arith.constant 0 : i32
    %c0_i32_0 = arith.constant 0 : i32
    %c0_i32_1 = arith.constant 0 : i32
    return %arg0, %c0_i32, %c0_i32_0 : i32, i32, i32
  }
  func.func @transform_1(%arg0: i32) -> (i32, i32, i32) {
    %c0_i32 = arith.constant 0 : i32
    %c0_i32_0 = arith.constant 0 : i32
    %c0_i32_1 = arith.constant 0 : i32
    %c0_i32_2 = arith.constant 0 : i32
    return %c0_i32, %c0_i32_0, %c0_i32_1 : i32, i32, i32
  }
  func.func @transform_2(%arg0: i32) -> (i32, i32, i32) {
    %c0_i32 = arith.constant 0 : i32
    %c0_i32_0 = arith.constant 0 : i32
    %c0_i32_1 = arith.constant 0 : i32
    %c0_i32_2 = arith.constant 0 : i32
    return %c0_i32, %c0_i32_0, %c0_i32_1 : i32, i32, i32
  }
  func.func @transform_3(%arg0: i32) -> (i32, i32, i32) {
    %c0_i32 = arith.constant 0 : i32
    %c0_i32_0 = arith.constant 0 : i32
    %c0_i32_1 = arith.constant 0 : i32
    return %arg0, %c0_i32, %c0_i32_0 : i32, i32, i32
  }
}

</mosaic_0001>

<bundles_post_ra>
// kernel: tpu_custom_call.1
= control target key start
LH: loop header
LB: loop body
LE: loop exit
PB: predicated region body
PF: predicated region fallthrough
CT: control target
= control target key end

     0   :  { %8 = vsyncpa [#allocation4], 0  ;;  %s1968_s0 = inlined_call_operand.vmem [shape: f32[2,16,32], index: 0, kind: input, shape index: {}]   ;;  %s1969_s1 = inlined_call_operand.vmem [shape: bf16[5,160,32], index: 1, kind: input, shape index: {}]   ;;  %s1970_s2 = inlined_call_operand.vmem [shape: f32[5,1,32], index: 2, kind: input, shape index: {}]   ;;  %s1971_s3 = inlined_call_operand.hbm [shape: f32[2,16,32], index: 3, kind: output, shape index: {}]  }
   0x1   :  { %10 = vsyncpa [#allocation4 + $0x1], 0  ;;  %s1653_s12 = smov 0   ;;  %s1655_s13 = smov 0  }
   0x2   :  { %s1657_s14 = smov 0   ;;  %s1659_s15 = smov 0  }
   0x3 LB: > { %s1674_s16 = sadd.s32 4294967295, %s1625_s15   ;;  %s1069_s17 = sadd.s32 4294967294, %s1625_s15   ;;  %s1625_s15 = sphi %s1659_s15, %s1977_s15   ;;  %s1621_s14 = sphi %s1657_s14, %s1976_s14   ;;  %s1617_s13 = sphi %s1655_s13, %s1975_s13   ;;  %s1613_s12 = sphi %s1653_s12, %s1974_s12  }
   0x4   : > { %s1678_s18 = sadd.s32 1, %s1625_s15   ;;  %s91_s19 = sadd.s32 1, %s1621_s14 }
   0x5   : > { %s88_s20 = ssub.s32 %s1625_s15, %s1678_s18  ;;  %p101_p0 = scmp.ne.s32.totalorder %s1621_s14, %s1617_s13 }
   0x6   : > { %p89_p1 = scmp.eq.s32.totalorder %s88_s20, 0  ;;  %p102_p2 = scmp.eq.s32.totalorder %s1674_s16, 1 }
   0x7   : > { %p107_p3 = scmp.ne.s32.totalorder %s1617_s13, %s1613_s12  ;;  %p108_p4 = scmp.eq.s32.totalorder %s1069_s17, 1 }
   0x8   : > { %s1689_s21 = scalar_select %p89_p1, %s1621_s14, %s91_s19  }
   0x9   : > { %p1691_p5 = por %p102_p2, %p101_p0  ;;  %p1695_p6 = por %p108_p4, %p107_p3 }
   0xa   : > { %p1072_p7 = scmp.ge.s32.totalorder %s1625_s15, 1  ;;  %p140_p8 = scmp.lt.s32.totalorder %s1625_s15, 3 }
   0xc   : > { %p141_p9 = pnand %p1072_p7, %p140_p8 }
   0xd   : > { %p164_p10 = scmp.lt.s32.totalorder (!%p141_p9), %s1674_s16, 1  ;;  %s1628_s17 = smov (!%p141_p9), 32  }
   0xe   : > { %144 = sbr.rel (%p141_p9) target bundleno = 1443 (0x5a3), region = 32  ;;  %s1629_s19 = smov (!%p141_p9), 96  }
   0xf   : > { %s1630_s20 = smov (!%p141_p9), 64   ;;  %s1421_s6 = sshll.u32 (!%p141_p9), %s1674_s16, 4 }
  0x10   : > { %s1003_s9 = scalar_lea.hbm (!%p141_p9), %s1971_s3, %s1421_s6  ;;  %s1583_s26 = scalar_lea.hbm (!%p141_p9), %s1971_s3, 32 }
  0x13   : > { %vm170_vm0 = vcmask 261120   ;;  %v1378_v0 = vld [vmem:[%s1969_s1 + $0x38] sm:$0xff]  ;;  %v1627_v1 = vmov 0.0   ;;  %v1377_v2 = vld [vmem:[%s1969_s1 + $0x30] sm:$0xff]  ;;  %s165_s28 = scalar_select %p164_p10, %s1674_s16, 1  ;;  %v1376_v5 = vld [vmem:[%s1969_s1 + $0x28] sm:$0xff] }
  0x14   : > { %171 = vst.msk [vmem:[#allocation2] sm:$0xff] %vm170_vm0, %v1627_v1  ;;  %309 = vmatpush.bf16.msra.mxu0 %v1378_v0  ;;  %v1375_v6 = vld [vmem:[%s1969_s1 + $0x20] sm:$0xff]  ;;  %v1374_v8 = vld [vmem:[%s1969_s1 + $0x18] sm:$0xff]  ;;  %v1380_v17 = vld [vmem:[%s1969_s1 + $0x48] sm:$0xff]  ;;  %vm214_vm1 = vcmask 523264   ;;  %vm217_vm2 = vcmask 785408  }
  0x15   : > { %172 = vst.msk [vmem:[#allocation2 + $0x8] sm:$0xff] %vm170_vm0, %v1627_v1  ;;  %s1370_s29 = sshll.u32 %s165_s28, 4  ;;  %329 = vmatpush.bf16.msra.mxu1 %v1380_v17  ;;  %v1373_v18 = vld [vmem:[%s1969_s1 + $0x10] sm:$0xff]  ;;  %v1379_v19 = vld [vmem:[%s1969_s1 + $0x40] sm:$0xff]  ;;  %v1372_v20 = vld [vmem:[%s1969_s1 + $0x8] sm:$0xff] }
  0x16   : > { %173 = vst.msk [vmem:[#allocation2 + $0x10] sm:$0xff] %vm170_vm0, %v1627_v1  ;;  %s168_s5 = scalar_lea.vmem %s1968_s0, %s1370_s29  ;;  %v1371_v24 = vld [vmem:[%s1969_s1] sm:$0xff]  ;;  %v1390_v43 = vld [vmem:[%s1969_s1 + $0x98] sm:$0xff]  ;;  %v1389_v44 = vld [vmem:[%s1969_s1 + $0x90] sm:$0xff]  ;;  %s161_s29 = sand.u32 1, %s1617_s13  }
  0x17   : > { %v174_v3 = vld [vmem:[%s168_s5] sm:$0xff]  ;;  %v175_v4 = vld [vmem:[%s168_s5 + $0x8] sm:$0xff]  ;;  %492 = vmatpush.bf16.msra.mxu3 %v1390_v43  ;;  %s1073_s5 = sshll.u32 %s161_s29, 4  ;;  %s992_s16 = scalar_lea.sflag [#allocation4], %s161_s29 }
  0x18   : > { %310 = vmatpush.bf16.msra.mxu0 %v1377_v2  ;;  %176 = vst.msk [vmem:[#allocation2 + $0x2] sm:$0xff] %vm170_vm0, %v174_v3  ;;  %v1542_v45 = vld [vmem:[%s1970_s2] ss:$0 sm:$0xff] }
  0x19   : > { %177 = vst.msk [vmem:[#allocation2 + $0xa] sm:$0xff] %vm170_vm0, %v175_v4  ;;  %330 = vmatpush.bf16.msra.mxu1 %v1379_v19  ;;  %v1388_v4 = vld [vmem:[%s1969_s1 + $0x88] sm:$0xff] }
  0x1a   : > { %472 = vmatpush.bf16.msra.mxu2 %v1388_v4 }
  0x1b   : > { %493 = vmatpush.bf16.msra.mxu3 %v1389_v44 }
  0x1c   : > { %311 = vmatpush.bf16.msra.mxu0 %v1376_v5  ;;  %v1387_v5 = vld [vmem:[%s1969_s1 + $0x80] sm:$0xff] }
  0x1e   : > { %473 = vmatpush.bf16.msra.mxu2 %v1387_v5 }
  0x1f   : > { %v180_v7 = vld [vmem:[#allocation2 + $0x1] sm:$0xff] }
  0x20   : > { %312 = vmatpush.bf16.msra.mxu0 %v1375_v6  ;;  %v181_v9 = vld [vmem:[#allocation2 + $0x9] sm:$0xff]  ;;  %v178_v29 = vld [vmem:[#allocation2] sm:$0xff]  ;;  %v1386_v6 = vld [vmem:[%s1969_s1 + $0x78] sm:$0xff] }
  0x21   : > { %v184_v10 = vld [vmem:[#allocation2 + $0x3] sm:$0xff]  ;;  %v1467_v11 = vpack.i.bf16 %v181_v9, %v180_v7  ;;  %v185_v12 = vld [vmem:[#allocation2 + $0xb] sm:$0xff] }
  0x22   : > { %v1477_v13 = vpack.i.bf16 %v185_v12, %v184_v10  ;;  %v182_v14 = vld [vmem:[#allocation2 + $0x2] sm:$0xff]  ;;  %v183_v15 = vld [vmem:[#allocation2 + $0xa] sm:$0xff]  ;;  %474 = vmatpush.bf16.msra.mxu2 %v1386_v6  ;;  %v1382_v10 = vld [vmem:[%s1969_s1 + $0x58] sm:$0xff] }
  0x23   : > { %1468 = vrot.lane.b32.xlu0 %v1467_v11, %s1628_s17  ;;  %v1472_v16 = vpack.i.bf16 %v183_v15, %v182_v14  ;;  %v186_v21 = vld [vmem:[#allocation2 + $0x4] sm:$0xff]  ;;  %v187_v22 = vld [vmem:[#allocation2 + $0xc] sm:$0xff] }
  0x24   : > { %313 = vmatpush.bf16.msra.mxu0 %v1374_v8  ;;  %1478 = vrot.lane.b32.xlu1 %v1477_v13, %s1629_s19  ;;  %v221_v23 = vpack.c.bf16 %v187_v22, %v186_v21  ;;  %v179_v30 = vld [vmem:[#allocation2 + $0x8] sm:$0xff]  ;;  %v1385_v7 = vld [vmem:[%s1969_s1 + $0x70] sm:$0xff]  ;;  %v1383_v9 = vld [vmem:[%s1969_s1 + $0x60] sm:$0xff] }
  0x25   : > { %v1384_v8 = vld [vmem:[%s1969_s1 + $0x68] sm:$0xff]  ;;  %v1381_v11 = vld [vmem:[%s1969_s1 + $0x50] sm:$0xff] }
  0x26   : > { %1116 = vmatmul.msk.bf16.vlgmr.msra.gmra.mxu1 %vm170_vm0, %v221_v23  ;;  %475 = vmatpush.bf16.msra.mxu2 %v1385_v7 }
  0x28   : > { %314 = vmatpush.bf16.msra.mxu0 %v1373_v18 }
  0x2a   : > { %476 = vmatpush.bf16.msra.mxu2 %v1384_v8 }
  0x2b   : > { %1473 = vrot.lane.b32.xlu0 %v1472_v16, %s1630_s20 }
  0x2c   : > { %315 = vmatpush.bf16.msra.mxu0 %v1372_v20 }
  0x2e   : > { %477 = vmatpush.bf16.msra.mxu2 %v1383_v9 }
  0x30   : > { %316 = vmatpush.bf16.msra.mxu0 %v1371_v24 }
  0x32   : > { %478 = vmatpush.bf16.msra.mxu2 %v1382_v10 }
  0x36   : > { %479 = vmatpush.bf16.msra.mxu2 %v1381_v11 }
  0x95   : > { %v1469_v25 = vpop.permute.xlu0 %1468 }
  0x96   : > { %v1479_v26 = vpop.permute.xlu1 %1478  ;;  %v1471_v27 = vunpack.i.h.bf16 %v1469_v25  ;;  %v1470_v28 = vunpack.i.l.bf16 %v1469_v25 }
  0x97   : > { %v1481_v32 = vunpack.i.h.bf16 %v1479_v26  ;;  %v1480_v33 = vunpack.i.l.bf16 %v1479_v26 }
  0x98   : > { %v212_v36 = vsel %vm170_vm0, %v178_v29, %v1470_v28  ;;  %v213_v37 = vsel %vm170_vm0, %v179_v30, %v1471_v27  ;;  %v1400_v30 = vld [vmem:[%s1969_s1 + $0xe8] sm:$0xff] }
  0x99   : > { %655 = vmatpush.bf16.msrb.mxu3 %v1400_v30 }
  0x9d   : > { %v1474_v31 = vpop.permute.xlu0 %1473 }
  0x9e   : > { %v1476_v34 = vunpack.i.h.bf16 %v1474_v31  ;;  %v1475_v35 = vunpack.i.l.bf16 %v1474_v31  ;;  %v1399_v31 = vld [vmem:[%s1969_s1 + $0xe0] sm:$0xff] }
  0x9f   : > { %656 = vmatpush.bf16.msrb.mxu3 %v1399_v31 }
  0xa0   : > { %v215_v38 = vsel %vm214_vm1, %v212_v36, %v1475_v35  ;;  %v216_v39 = vsel %vm214_vm1, %v213_v37, %v1476_v34 }
  0xa1   : > { %v218_v40 = vsel %vm217_vm2, %v215_v38, %v1480_v33  ;;  %v219_v41 = vsel %vm217_vm2, %v216_v39, %v1481_v32  ;;  %v1543_v32 = vld [vmem:[%s1970_s2 + $0x1] ss:$0 sm:$0xff] }
  0xa2   : > { %v220_v42 = vpack.c.bf16 %v219_v41, %v218_v40 }
  0xa3   : > { %v332_v46 = vpop.f32.mrf.mxu1 }
  0xa4   : > { %317 = vmatmul.bf16.vlgmr.msra.gmra.mxu0 %v220_v42 }
  0xab   : > { %v334_v52 = vpop.f32.mrf.mxu1 }
 0x121   : > { %v318_v47 = vpop.f32.mrf.mxu0 }
 0x122   : > { %v319_v48 = vadd.f32 %v1542_v45, %v318_v47 }
 0x124   : > { %v333_v49 = vadd.f32 %v332_v46, %v319_v48 }
 0x126   : > { %1547 = vtanh.f32 %v333_v49 }
 0x129   : > { %v320_v50 = vpop.f32.mrf.mxu0 }
 0x12a   : > { %v321_v51 = vadd.f32 %v1542_v45, %v320_v50 }
 0x12c   : > { %v1548_v53 = vpop.eup %1547  ;;  %v335_v54 = vadd.f32 %v334_v52, %v321_v51 }
 0x12d   : > { %339 = vst.msk [vmem:[#allocation2 + $0x2] sm:$0xff] %vm170_vm0, %v1548_v53 }
 0x12e   : > { %1549 = vtanh.f32 %v335_v54 }
 0x134   : > { %v1550_v55 = vpop.eup %1549  ;;  %v345_v56 = vld [vmem:[#allocation2 + $0x2] sm:$0xff] }
 0x135   : > { %340 = vst.msk [vmem:[#allocation2 + $0xa] sm:$0xff] %vm170_vm0, %v1550_v55  ;;  %v343_v62 = vld [vmem:[#allocation2 + $0x1] sm:$0xff]  ;;  %v1398_v55 = vld [vmem:[%s1969_s1 + $0xd8] sm:$0xff] }
 0x136   : > { %v341_v19 = vld [vmem:[#allocation2] sm:$0xff]  ;;  %635 = vmatpush.bf16.msrb.mxu1 %v1398_v55 }
 0x13c   : > { %v349_v57 = vld [vmem:[#allocation2 + $0x4] sm:$0xff]  ;;  %v350_v58 = vld [vmem:[#allocation2 + $0xc] sm:$0xff] }
 0x13d   : > { %v346_v59 = vld [vmem:[#allocation2 + $0xa] sm:$0xff]  ;;  %v382_v60 = vpack.c.bf16 %v350_v58, %v349_v57  ;;  %v1395_v58 = vld [vmem:[%s1969_s1 + $0xc0] sm:$0xff] }
 0x13e   : > { %v1487_v61 = vpack.i.bf16 %v346_v59, %v345_v56  ;;  %v344_v63 = vld [vmem:[#allocation2 + $0x9] sm:$0xff]  ;;  %v1394_v59 = vld [vmem:[%s1969_s1 + $0xb8] sm:$0xff] }
 0x13f   : > { %v1482_v0 = vpack.i.bf16 %v344_v63, %v343_v62  ;;  %1178 = vmatmul.msk.bf16.vlgmr.msra.gmra.mxu3 %vm170_vm0, %v382_v60  ;;  %v347_v1 = vld [vmem:[#allocation2 + $0x3] sm:$0xff]  ;;  %v348_v2 = vld [vmem:[#allocation2 + $0xb] sm:$0xff] }
 0x140   : > { %1488 = vrot.lane.b32.xlu2 %v1487_v61, %s1630_s20  ;;  %v1492_v3 = vpack.i.bf16 %v348_v2, %v347_v1  ;;  %v342_v20 = vld [vmem:[#allocation2 + $0x8] sm:$0xff]  ;;  %v1397_v56 = vld [vmem:[%s1969_s1 + $0xd0] sm:$0xff]  ;;  %v1391_v62 = vld [vmem:[%s1969_s1 + $0xa0] sm:$0xff] }
 0x141   : > { %1483 = vrot.lane.b32.xlu1 %v1482_v0, %s1628_s17  ;;  %636 = vmatpush.bf16.msrb.mxu1 %v1397_v56  ;;  %v1396_v57 = vld [vmem:[%s1969_s1 + $0xc8] sm:$0xff]  ;;  %v1393_v60 = vld [vmem:[%s1969_s1 + $0xb0] sm:$0xff] }
 0x142   : > { %v1392_v61 = vld [vmem:[%s1969_s1 + $0xa8] sm:$0xff] }
 0x145   : > { %637 = vmatpush.bf16.msrb.mxu1 %v1396_v57 }
 0x148   : > { %1493 = vrot.lane.b32.xlu2 %v1492_v3, %s1629_s19 }
 0x149   : > { %638 = vmatpush.bf16.msrb.mxu1 %v1395_v58 }
 0x14d   : > { %639 = vmatpush.bf16.msrb.mxu1 %v1394_v59 }
 0x151   : > { %640 = vmatpush.bf16.msrb.mxu1 %v1393_v60 }
 0x155   : > { %641 = vmatpush.bf16.msrb.mxu1 %v1392_v61 }
 0x159   : > { %642 = vmatpush.bf16.msrb.mxu1 %v1391_v62 }
 0x19a   : > { %v1489_v12 = vpop.permute.xlu2 %1488 }
 0x19b   : > { %v1491_v17 = vunpack.i.h.bf16 %v1489_v12  ;;  %v1490_v18 = vunpack.i.l.bf16 %v1489_v12 }
 0x1a2   : > { %v1494_v13 = vpop.permute.xlu2 %1493 }
 0x1a3   : > { %v1496_v21 = vunpack.i.h.bf16 %v1494_v13  ;;  %v1495_v22 = vunpack.i.l.bf16 %v1494_v13 }
 0x1b3   : > { %v1484_v14 = vpop.permute.xlu1 %1483 }
 0x1b4   : > { %v1486_v15 = vunpack.i.h.bf16 %v1484_v14  ;;  %v1485_v16 = vunpack.i.l.bf16 %v1484_v14 }
 0x1b6   : > { %v375_v23 = vsel %vm170_vm0, %v341_v19, %v1485_v16  ;;  %v376_v24 = vsel %vm170_vm0, %v342_v20, %v1486_v15  ;;  %v1544_v19 = vld [vmem:[%s1970_s2 + $0x2] ss:$0 sm:$0xff] }
 0x1b7   : > { %v377_v25 = vsel %vm214_vm1, %v375_v23, %v1490_v18  ;;  %v378_v26 = vsel %vm214_vm1, %v376_v24, %v1491_v17  ;;  %v1410_v17 = vld [vmem:[%s1969_s1 + $0x138] sm:$0xff]  ;;  %v1409_v18 = vld [vmem:[%s1969_s1 + $0x130] sm:$0xff] }
 0x1b8   : > { %v379_v27 = vsel %vm217_vm2, %v377_v25, %v1495_v22  ;;  %v380_v28 = vsel %vm217_vm2, %v378_v26, %v1496_v21  ;;  %818 = vmatpush.bf16.msrb.mxu0 %v1410_v17 }
 0x1b9   : > { %v381_v29 = vpack.c.bf16 %v380_v28, %v379_v27 }
 0x1bb   : > { %480 = vmatmul.bf16.vlgmr.msra.gmra.mxu2 %v381_v29 }
 0x1bc   : > { %819 = vmatpush.bf16.msrb.mxu0 %v1409_v18 }
 0x1c2   : > { %v495_v33 = vpop.f32.mrf.mxu3 }
 0x1ca   : > { %v497_v39 = vpop.f32.mrf.mxu3 }
 0x23e   : > { %v481_v34 = vpop.f32.mrf.mxu2 }
 0x23f   : > { %v482_v35 = vadd.f32 %v1543_v32, %v481_v34 }
 0x241   : > { %v496_v36 = vadd.f32 %v495_v33, %v482_v35 }
 0x243   : > { %1551 = vtanh.f32 %v496_v36 }
 0x246   : > { %v483_v37 = vpop.f32.mrf.mxu2 }
 0x247   : > { %v484_v38 = vadd.f32 %v1543_v32, %v483_v37 }
 0x249   : > { %v1552_v40 = vpop.eup %1551  ;;  %v498_v41 = vadd.f32 %v497_v39, %v484_v38 }
 0x24a   : > { %502 = vst.msk [vmem:[#allocation2 + $0x2] sm:$0xff] %vm170_vm0, %v1552_v40 }
 0x24b   : > { %1553 = vtanh.f32 %v498_v41 }
 0x251   : > { %v1554_v42 = vpop.eup %1553  ;;  %v508_v43 = vld [vmem:[#allocation2 + $0x2] sm:$0xff] }
 0x252   : > { %503 = vst.msk [vmem:[#allocation2 + $0xa] sm:$0xff] %vm170_vm0, %v1554_v42  ;;  %v506_v44 = vld [vmem:[#allocation2 + $0x1] sm:$0xff] }
 0x253   : > { %v504_v6 = vld [vmem:[#allocation2] sm:$0xff]  ;;  %v1408_v42 = vld [vmem:[%s1969_s1 + $0x128] sm:$0xff] }
 0x254   : > { %798 = vmatpush.bf16.msra.mxu3 %v1408_v42 }
 0x259   : > { %v512_v45 = vld [vmem:[#allocation2 + $0x4] sm:$0xff]  ;;  %v513_v46 = vld [vmem:[#allocation2 + $0xc] sm:$0xff] }
 0x25a   : > { %v510_v47 = vld [vmem:[#allocation2 + $0x3] sm:$0xff]  ;;  %v545_v48 = vpack.c.bf16 %v513_v46, %v512_v45  ;;  %v511_v49 = vld [vmem:[#allocation2 + $0xb] sm:$0xff] }
 0x25b   : > { %v509_v50 = vld [vmem:[#allocation2 + $0xa] sm:$0xff]  ;;  %v1507_v52 = vpack.i.bf16 %v511_v49, %v510_v47  ;;  %v1403_v47 = vld [vmem:[%s1969_s1 + $0x100] sm:$0xff] }
 0x25c   : > { %v507_v51 = vld [vmem:[#allocation2 + $0x9] sm:$0xff]  ;;  %v1502_v53 = vpack.i.bf16 %v509_v50, %v508_v43  ;;  %1240 = vmatmul.msk.bf16.vlgmr.msrb.gmra.mxu3 %vm170_vm0, %v545_v48  ;;  %v1407_v43 = vld [vmem:[%s1969_s1 + $0x120] sm:$0xff]  ;;  %v1402_v48 = vld [vmem:[%s1969_s1 + $0xf8] sm:$0xff] }
 0x25d   : > { %v1497_v54 = vpack.i.bf16 %v507_v51, %v506_v44  ;;  %1508 = vrot.lane.b32.xlu2 %v1507_v52, %s1629_s19  ;;  %v505_v7 = vld [vmem:[#allocation2 + $0x8] sm:$0xff]  ;;  %799 = vmatpush.bf16.msra.mxu3 %v1407_v43  ;;  %v1406_v44 = vld [vmem:[%s1969_s1 + $0x118] sm:$0xff]  ;;  %v1405_v45 = vld [vmem:[%s1969_s1 + $0x110] sm:$0xff] }
 0x25e   : > { %1503 = vrot.lane.b32.xlu1 %v1502_v53, %s1630_s20  ;;  %v1404_v46 = vld [vmem:[%s1969_s1 + $0x108] sm:$0xff]  ;;  %v1401_v49 = vld [vmem:[%s1969_s1 + $0xf0] sm:$0xff] }
 0x25f   : > { %1498 = vrot.lane.b32.xlu0 %v1497_v54, %s1628_s17 }
 0x261   : > { %800 = vmatpush.bf16.msra.mxu3 %v1406_v44 }
 0x265   : > { %801 = vmatpush.bf16.msra.mxu3 %v1405_v45 }
 0x269   : > { %802 = vmatpush.bf16.msra.mxu3 %v1404_v46 }
 0x26d   : > { %803 = vmatpush.bf16.msra.mxu3 %v1403_v47 }
 0x271   : > { %804 = vmatpush.bf16.msra.mxu3 %v1402_v48 }
 0x275   : > { %805 = vmatpush.bf16.msra.mxu3 %v1401_v49 }
 0x2b7   : > { %v1509_v0 = vpop.permute.xlu2 %1508 }
 0x2b8   : > { %v1511_v8 = vunpack.i.h.bf16 %v1509_v0  ;;  %v1510_v9 = vunpack.i.l.bf16 %v1509_v0 }
 0x2d0   : > { %v1504_v63 = vpop.permute.xlu1 %1503 }
 0x2d1   : > { %v1506_v1 = vunpack.i.h.bf16 %v1504_v63  ;;  %v1505_v2 = vunpack.i.l.bf16 %v1504_v63  ;;  %v1499_v3 = vpop.permute.xlu0 %1498 }
 0x2d2   : > { %v1501_v4 = vunpack.i.h.bf16 %v1499_v3  ;;  %v1500_v5 = vunpack.i.l.bf16 %v1499_v3 }
 0x2d4   : > { %v538_v10 = vsel %vm170_vm0, %v504_v6, %v1500_v5  ;;  %v539_v11 = vsel %vm170_vm0, %v505_v7, %v1501_v4  ;;  %v1420_v4 = vld [vmem:[%s1969_s1 + $0x188] sm:$0xff]  ;;  %v1419_v5 = vld [vmem:[%s1969_s1 + $0x180] sm:$0xff] }
 0x2d5   : > { %v540_v12 = vsel %vm214_vm1, %v538_v10, %v1505_v2  ;;  %v541_v13 = vsel %vm214_vm1, %v539_v11, %v1506_v1  ;;  %981 = vmatpush.bf16.msra.mxu1 %v1420_v4  ;;  %v1545_v6 = vld [vmem:[%s1970_s2 + $0x3] ss:$0 sm:$0xff] }
 0x2d6   : > { %v542_v14 = vsel %vm217_vm2, %v540_v12, %v1510_v9  ;;  %v543_v15 = vsel %vm217_vm2, %v541_v13, %v1511_v8 }
 0x2d7   : > { %v544_v16 = vpack.c.bf16 %v543_v15, %v542_v14 }
 0x2d9   : > { %643 = vmatmul.bf16.vlgmr.msrb.gmra.mxu1 %v544_v16 }
 0x2da   : > { %982 = vmatpush.bf16.msra.mxu1 %v1419_v5 }
 0x2df   : > { %v658_v20 = vpop.f32.mrf.mxu3 }
 0x2e7   : > { %v660_v26 = vpop.f32.mrf.mxu3 }
 0x356   : > { %v644_v21 = vpop.f32.mrf.mxu1 }
 0x357   : > { %v645_v22 = vadd.f32 %v1544_v19, %v644_v21 }
 0x359   : > { %v659_v23 = vadd.f32 %v658_v20, %v645_v22 }
 0x35b   : > { %1555 = vtanh.f32 %v659_v23 }
 0x35e   : > { %v646_v24 = vpop.f32.mrf.mxu1 }
 0x35f   : > { %v647_v25 = vadd.f32 %v1544_v19, %v646_v24 }
 0x361   : > { %v1556_v27 = vpop.eup %1555  ;;  %v661_v28 = vadd.f32 %v660_v26, %v647_v25 }
 0x362   : > { %665 = vst.msk [vmem:[#allocation2 + $0x2] sm:$0xff] %vm170_vm0, %v1556_v27 }
 0x363   : > { %1557 = vtanh.f32 %v661_v28 }
 0x369   : > { %v1558_v29 = vpop.eup %1557  ;;  %v671_v30 = vld [vmem:[#allocation2 + $0x2] sm:$0xff] }
 0x36a   : > { %666 = vst.msk [vmem:[#allocation2 + $0xa] sm:$0xff] %vm170_vm0, %v1558_v29  ;;  %v669_v31 = vld [vmem:[#allocation2 + $0x1] sm:$0xff]  ;;  %v1418_v29 = vld [vmem:[%s1969_s1 + $0x178] sm:$0xff] }
 0x36b   : > { %v667_v57 = vld [vmem:[#allocation2] sm:$0xff]  ;;  %961 = vmatpush.bf16.msrb.mxu2 %v1418_v29 }
 0x371   : > { %v675_v32 = vld [vmem:[#allocation2 + $0x4] sm:$0xff]  ;;  %v676_v33 = vld [vmem:[#allocation2 + $0xc] sm:$0xff] }
 0x372   : > { %v673_v34 = vld [vmem:[#allocation2 + $0x3] sm:$0xff]  ;;  %v708_v35 = vpack.c.bf16 %v676_v33, %v675_v32  ;;  %v674_v36 = vld [vmem:[#allocation2 + $0xb] sm:$0xff]  ;;  %v1414_v33 = vld [vmem:[%s1969_s1 + $0x158] sm:$0xff] }
 0x373   : > { %v672_v37 = vld [vmem:[#allocation2 + $0xa] sm:$0xff]  ;;  %v1522_v39 = vpack.i.bf16 %v674_v36, %v673_v34  ;;  %v1415_v32 = vld [vmem:[%s1969_s1 + $0x160] sm:$0xff] }
 0x374   : > { %v670_v38 = vld [vmem:[#allocation2 + $0x9] sm:$0xff]  ;;  %v1517_v40 = vpack.i.bf16 %v672_v37, %v671_v30  ;;  %1302 = vmatmul.msk.bf16.vlgmr.msrb.gmra.mxu0 %vm170_vm0, %v708_v35  ;;  %v1411_v36 = vld [vmem:[%s1969_s1 + $0x140] sm:$0xff] }
 0x375   : > { %v1512_v41 = vpack.i.bf16 %v670_v38, %v669_v31  ;;  %1523 = vrot.lane.b32.xlu2 %v1522_v39, %s1629_s19  ;;  %v668_v58 = vld [vmem:[#allocation2 + $0x8] sm:$0xff]  ;;  %v1417_v30 = vld [vmem:[%s1969_s1 + $0x170] sm:$0xff] }
 0x376   : > { %1518 = vrot.lane.b32.xlu1 %v1517_v40, %s1630_s20  ;;  %962 = vmatpush.bf16.msrb.mxu2 %v1417_v30  ;;  %v1416_v31 = vld [vmem:[%s1969_s1 + $0x168] sm:$0xff]  ;;  %v1413_v34 = vld [vmem:[%s1969_s1 + $0x150] sm:$0xff] }
 0x377   : > { %1513 = vrot.lane.b32.xlu0 %v1512_v41, %s1628_s17  ;;  %v1412_v35 = vld [vmem:[%s1969_s1 + $0x148] sm:$0xff] }
 0x37a   : > { %963 = vmatpush.bf16.msrb.mxu2 %v1416_v31 }
 0x37e   : > { %964 = vmatpush.bf16.msrb.mxu2 %v1415_v32 }
 0x382   : > { %965 = vmatpush.bf16.msrb.mxu2 %v1414_v33 }
 0x386   : > { %966 = vmatpush.bf16.msrb.mxu2 %v1413_v34 }
 0x38a   : > { %967 = vmatpush.bf16.msrb.mxu2 %v1412_v35 }
 0x38e   : > { %968 = vmatpush.bf16.msrb.mxu2 %v1411_v36 }
 0x3cf   : > { %v1524_v51 = vpop.permute.xlu2 %1523 }
 0x3d0   : > { %v1526_v59 = vunpack.i.h.bf16 %v1524_v51  ;;  %v1525_v60 = vunpack.i.l.bf16 %v1524_v51 }
 0x3e8   : > { %v1519_v50 = vpop.permute.xlu1 %1518 }
 0x3e9   : > { %v1521_v52 = vunpack.i.h.bf16 %v1519_v50  ;;  %v1520_v53 = vunpack.i.l.bf16 %v1519_v50  ;;  %v1514_v54 = vpop.permute.xlu0 %1513 }
 0x3ea   : > { %v1516_v55 = vunpack.i.h.bf16 %v1514_v54  ;;  %v1515_v56 = vunpack.i.l.bf16 %v1514_v54 }
 0x3ec   : > { %v701_v61 = vsel %vm170_vm0, %v667_v57, %v1515_v56  ;;  %v702_v62 = vsel %vm170_vm0, %v668_v58, %v1516_v55  ;;  %v1546_v55 = vld [vmem:[%s1970_s2 + $0x4] ss:$0 sm:$0xff] }
 0x3ed   : > { %v703_v63 = vsel %vm214_vm1, %v701_v61, %v1520_v53  ;;  %v704_v0 = vsel %vm214_vm1, %v702_v62, %v1521_v52 }
 0x3ee   : > { %v705_v1 = vsel %vm217_vm2, %v703_v63, %v1525_v60  ;;  %v706_v2 = vsel %vm217_vm2, %v704_v0, %v1526_v59 }
 0x3ef   : > { %v707_v3 = vpack.c.bf16 %v706_v2, %v705_v1 }
 0x3f1   : > { %806 = vmatmul.bf16.vlgmr.msra.gmra.mxu3 %v707_v3  ;;  %v821_v7 = vpop.f32.mrf.mxu0 }
 0x3f9   : > { %v823_v13 = vpop.f32.mrf.mxu0 }
 0x474   : > { %v807_v8 = vpop.f32.mrf.mxu3 }
 0x475   : > { %v808_v9 = vadd.f32 %v1545_v6, %v807_v8 }
 0x477   : > { %v822_v10 = vadd.f32 %v821_v7, %v808_v9 }
 0x479   : > { %1559 = vtanh.f32 %v822_v10 }
 0x47c   : > { %v809_v11 = vpop.f32.mrf.mxu3 }
 0x47d   : > { %v810_v12 = vadd.f32 %v1545_v6, %v809_v11 }
 0x47f   : > { %v1560_v14 = vpop.eup %1559  ;;  %v824_v15 = vadd.f32 %v823_v13, %v810_v12 }
 0x480   : > { %828 = vst.msk [vmem:[#allocation2 + $0x2] sm:$0xff] %vm170_vm0, %v1560_v14 }
 0x481   : > { %1561 = vtanh.f32 %v824_v15 }
 0x487   : > { %v1562_v16 = vpop.eup %1561  ;;  %v834_v17 = vld [vmem:[#allocation2 + $0x2] sm:$0xff] }
 0x488   : > { %829 = vst.msk [vmem:[#allocation2 + $0xa] sm:$0xff] %vm170_vm0, %v1562_v16  ;;  %v832_v18 = vld [vmem:[#allocation2 + $0x1] sm:$0xff] }
 0x489   : > { %v830_v44 = vld [vmem:[#allocation2] sm:$0xff] }
 0x48f   : > { %v838_v19 = vld [vmem:[#allocation2 + $0x4] sm:$0xff]  ;;  %v839_v20 = vld [vmem:[#allocation2 + $0xc] sm:$0xff] }
 0x490   : > { %v836_v21 = vld [vmem:[#allocation2 + $0x3] sm:$0xff]  ;;  %v871_v22 = vpack.c.bf16 %v839_v20, %v838_v19  ;;  %v837_v23 = vld [vmem:[#allocation2 + $0xb] sm:$0xff] }
 0x491   : > { %v835_v24 = vld [vmem:[#allocation2 + $0xa] sm:$0xff]  ;;  %v1537_v26 = vpack.i.bf16 %v837_v23, %v836_v21 }
 0x492   : > { %v833_v25 = vld [vmem:[#allocation2 + $0x9] sm:$0xff]  ;;  %v1532_v27 = vpack.i.bf16 %v835_v24, %v834_v17  ;;  %1364 = vmatmul.msk.bf16.vlgmr.msra.gmra.mxu1 %vm170_vm0, %v871_v22 }
 0x493   : > { %v1527_v28 = vpack.i.bf16 %v833_v25, %v832_v18  ;;  %1538 = vrot.lane.b32.xlu2 %v1537_v26, %s1629_s19  ;;  %v831_v45 = vld [vmem:[#allocation2 + $0x8] sm:$0xff]  ;;  %s163_s19 = scalar_lea.vmem [#allocation3], %s1073_s5 }
 0x494   : > { %1533 = vrot.lane.b32.xlu1 %v1532_v27, %s1630_s20  ;;  %s1004_s10 = sshll.u32 %s163_s19, 4  ;;  %s1005_s10 = int_to_ptr.vmem [resolvable:$true] %s1004_s10 }
 0x495   : > { %1528 = vrot.lane.b32.xlu0 %v1527_v28, %s1628_s17  ;;  %s1006_s17 = sshll.u32 %s1003_s9, 4  ;;  %s1007_s17 = int_to_ptr.hbm [resolvable:$true] %s1006_s17 }
 0x496   : > { %s1577_s20 = sshra.s32 %s1007_s17, 4  ;;  %s1578_s20 = int_to_ptr.hbm [resolvable:$true] %s1577_s20 }
 0x497   : > { %s1579_s11 = scalar_lea.hbm %s1578_s20, 16  ;;  %p1584_p0 = scmp.lt.s32.totalorder %s1578_s20, %s1971_s3 }
 0x498   : > { %p1580_p11 = scmp.ne.s32.totalorder %s1578_s20, %s1579_s11  ;;  %p1585_p1 = scmp.lt.s32.totalorder %s1583_s26, %s1579_s11 }
 0x49a   : > { %p1581_p12 = pnand %p1580_p11, %p1691_p5  ;;  %p1586_p2 = por %p1585_p1, %p1584_p0 }
 0x49c   : > { %p1582_p13 = pneg %p1581_p12 }
 0x49e   : > { %p1587_p3 = pnand %p1586_p2, %p1582_p13 }
 0x4ed   : > { %v1539_v38 = vpop.permute.xlu2 %1538 }
 0x4ee   : > { %v1541_v46 = vunpack.i.h.bf16 %v1539_v38  ;;  %v1540_v47 = vunpack.i.l.bf16 %v1539_v38 }
 0x506   : > { %v1534_v37 = vpop.permute.xlu1 %1533 }
 0x507   : > { %v1536_v39 = vunpack.i.h.bf16 %v1534_v37  ;;  %v1535_v40 = vunpack.i.l.bf16 %v1534_v37  ;;  %v1529_v41 = vpop.permute.xlu0 %1528 }
 0x508   : > { %v1531_v42 = vunpack.i.h.bf16 %v1529_v41  ;;  %v1530_v43 = vunpack.i.l.bf16 %v1529_v41 }
 0x50a   : > { %v864_v48 = vsel %vm170_vm0, %v830_v44, %v1530_v43  ;;  %v865_v49 = vsel %vm170_vm0, %v831_v45, %v1531_v42 }
 0x50b   : > { %v866_v50 = vsel %vm214_vm1, %v864_v48, %v1535_v40  ;;  %v867_v51 = vsel %vm214_vm1, %v865_v49, %v1536_v39 }
 0x50c   : > { %v868_v52 = vsel %vm217_vm2, %v866_v50, %v1540_v47  ;;  %v869_v53 = vsel %vm217_vm2, %v867_v51, %v1541_v46 }
 0x50d   : > { %v870_v54 = vpack.c.bf16 %v869_v53, %v868_v52 }
 0x50f   : > { %969 = vmatmul.bf16.vlgmr.msrb.gmra.mxu2 %v870_v54  ;;  %v984_v56 = vpop.f32.mrf.mxu1 }
 0x517   : > { %v986_v62 = vpop.f32.mrf.mxu1 }
 0x592   : > { %v970_v57 = vpop.f32.mrf.mxu2 }
 0x593   : > { %v971_v58 = vadd.f32 %v1546_v55, %v970_v57 }
 0x595   : > { %v985_v59 = vadd.f32 %v984_v56, %v971_v58 }
 0x597   : > { %989 = vst.msk [vmem:[%s163_s19] sm:$0xff] %vm170_vm0, %v985_v59 }
 0x59a   : > { %v972_v60 = vpop.f32.mrf.mxu2 }
 0x59b   : > { %v973_v61 = vadd.f32 %v1546_v55, %v972_v60 }
 0x59d   : > { %v987_v63 = vadd.f32 %v986_v62, %v973_v61 }
 0x59f   : > { %990 = vst.msk [vmem:[%s163_s19 + $0x8] sm:$0xff] %vm170_vm0, %v987_v63 }
 0x5a0   : > { %1590 = shalt.err (!%p1587_p3)
}
 0x5a1   : > { %s1631_s29 = smov 128   ;;  %s1632_s30 = smov 8  }
 0x5a2   : > { %1422 = dma.vmem_to_hbm [thread:$0]  (%p1691_p5), %s1005_s10, 256, %s1007_s17, %s992_s16, %s1631_s29, %s1631_s29, %s1632_s30  }
 0x5a3 PF: > { %p1428_p4 = scmp.ge.s32.totalorder %s1625_s15, 2  ;;  %s1021_s4 = sand.u32 1, %s1613_s12  }
 0x5a4   : > { %s1022_s5 = scalar_lea.sflag [#allocation4], %s1021_s4 }
 0x5a5   : > { %p1425_p7 = pnand %p1428_p4, %p1695_p6 }
 0x5a7   : > { %p1426_p8 = pneg %p1425_p7 }
 0x5a9   : > { %1608 = dma.done.wait (%p1426_p8), %s1022_s5, 256  }
 0x5aa   : > { %1610 = vsyncadd (%p1426_p8), %s1022_s5, 4294967040  ;;  %p13_p9 = scmp.ge.s32.totalorder %s1678_s18, 4   ;;  %s1974_s12 = smov %s1617_s13 }
 0x5ab   : > { %s1975_s13 = smov %s1621_s14  ;;  %s1976_s14 = smov %s1689_s21 }
 0x5ac   : > { %s1977_s15 = smov %s1678_s18  ;;  %15 = sbr.rel (!%p13_p9) target bundleno = 3 (0x3), region = 75 }
 0x5b1   :  { %1028 = vsyncpa [#allocation4], 1 }
 0x5b2   :  { %1030 = vsyncpa [#allocation4 + $0x1], 1 }

</bundles_post_ra>
